<compile_context>
chip_gen: v7x
topology: tpu7x:2x2x1
jax: 0.10.0
libtpu: 0.0.40
codegen_flags: <defaults>
</compile_context>

<pallas_src>
import functools

import jax
import jax.numpy as jnp
from jax.experimental import pallas as pl
from jax.experimental.pallas import tpu as pltpu


def _round_up(x: int, m: int) -> int:
    return ((x + m - 1) // m) * m


# --------------------------------------------------------------------------
# Fused MLP kernel: one grid step = (batch tile i, layer l)
# --------------------------------------------------------------------------
def _fused_mlp_kernel(x_ref, w_ref, b_ref, o_ref, h_ref, *,
                      n_hidden: int, negative_slope: float):
    # x_ref: (tm, D)  padded input batch tile (f32)     -- fetched once per i
    # w_ref: (D, D)   padded weight of layer l          -- pipelined over l
    # b_ref: (1, D)   padded bias of layer l (f32)
    # o_ref: (tm, D)  output tile, written only on the last layer
    # h_ref: (tm, D)  VMEM scratch: activation resident across the layer axis
    layer = pl.program_id(1)
    n_total = pl.num_programs(1)

    @pl.when(layer == 0)
    def _():
        h_ref[...] = x_ref[...].astype(jnp.float32)

    # y = h @ W + b  on the MXU with f32 accumulate (operands may be bf16).
    y = jnp.dot(h_ref[...].astype(w_ref.dtype), w_ref[...],
                preferred_element_type=jnp.float32)
    y = y + b_ref[...]

    # LeakyReLU(0.2) on hidden layers; identity (slope=1) on the final layer.
    slope = jnp.where(layer < n_hidden, negative_slope, 1.0)
    y = jnp.where(y >= 0, y, slope * y)

    h_ref[...] = y

    @pl.when(layer == n_total - 1)
    def _():
        o_ref[...] = y.astype(o_ref.dtype)


# --------------------------------------------------------------------------
# Parameter init (mirrors nn.Linear default init; weights stored as (in, out))
# --------------------------------------------------------------------------
def init_fc_discriminator_params(key, input_size, hidden_size, n_labels, n_layers):
    params = []
    in_dim = input_size
    for i in range(n_layers + 1):
        if i != 0:
            in_dim = hidden_size
        out_dim = hidden_size if i < n_layers else n_labels
        key, kw, kb = jax.random.split(key, 3)
        bound = 1.0 / (in_dim ** 0.5)
        w = jax.random.uniform(kw, (in_dim, out_dim), jnp.float32, -bound, bound)
        b = jax.random.uniform(kb, (out_dim,), jnp.float32, -bound, bound)
        params.append((w, b))
    return params


def pack_params(params, input_size, hidden_size, n_labels,
                compute_dtype=jnp.float32):
    """Zero-pad every layer to a common lane-dense (D_pad, D_pad) slab and stack."""
    d_pad = _round_up(max(input_size, hidden_size, n_labels), 128)
    n_total = len(params)
    w_stack = jnp.zeros((n_total, d_pad, d_pad), dtype=compute_dtype)
    b_stack = jnp.zeros((n_total, 1, d_pad), dtype=jnp.float32)
    for i, (w, b) in enumerate(params):
        di, do = w.shape
        w_stack = w_stack.at[i, :di, :do].set(w.astype(compute_dtype))
        b_stack = b_stack.at[i, 0, :do].set(b)
    return w_stack, b_stack, d_pad


# --------------------------------------------------------------------------
# Forward pass (eval semantics: Dropout is the identity)
# --------------------------------------------------------------------------
def fc_discriminator_forward(w_stack, b_stack, x, *, n_layers, n_labels,
                             dropout_p=0.0, block_b=256):
    # TODO(synk): training-mode Dropout (p>0) would need pltpu.prng_seed /
    # pltpu.prng_random_bits; eval-mode Dropout is the identity and is what is
    # implemented here.
    del dropout_p
    n_total, d_pad, _ = w_stack.shape
    B, din = x.shape

    tm = min(_round_up(B, 8), block_b)          # sublane-aligned batch tile
    b_pad = _round_up(B, tm)

    x_pad = jnp.zeros((b_pad, d_pad), dtype=jnp.float32)
    x_pad = x_pad.at[:B, :din].set(x)

    grid = (b_pad // tm, n_total)               # (batch tiles, layers)

    # VMEM budget: double-buffered x / W / b / out blocks + activation scratch.
    w_item = jnp.dtype(w_stack.dtype).itemsize
    est_vmem = (2 * (tm * d_pad * 4
                     + d_pad * d_pad * w_item
                     + d_pad * 4
                     + tm * d_pad * 4)
                + tm * d_pad * 4)
    vmem_limit = int(min(max(2 * est_vmem, 8 << 20), 64 << 20))

    kernel = functools.partial(_fused_mlp_kernel,
                               n_hidden=n_layers, negative_slope=0.2)

    out_pad = pl.pallas_call(
        kernel,
        out_shape=jax.ShapeDtypeStruct((b_pad, d_pad), jnp.float32),
        grid_spec=pltpu.PrefetchScalarGridSpec(
            num_scalar_prefetch=0,
            grid=grid,
            in_specs=[
                # x: block index only depends on i -> DMA'd once per batch tile.
                pl.BlockSpec((tm, d_pad), lambda i, l: (i, 0)),
                # layer-l weight slab (layer dim squeezed out of the kernel ref)
                pl.BlockSpec((None, d_pad, d_pad), lambda i, l: (l, 0, 0)),
                # layer-l bias
                pl.BlockSpec((None, 1, d_pad), lambda i, l: (l, 0, 0)),
            ],
            out_specs=pl.BlockSpec((tm, d_pad), lambda i, l: (i, 0)),
            scratch_shapes=[pltpu.VMEM((tm, d_pad), jnp.float32)],
        ),
        compiler_params=pltpu.CompilerParams(
            dimension_semantics=("parallel", "arbitrary"),
            vmem_limit_bytes=vmem_limit),
    )(x_pad, w_stack, b_stack)

    return out_pad[:B, :n_labels]


# --------------------------------------------------------------------------
# Pure-JAX reference
# --------------------------------------------------------------------------
def reference_forward(params, x, n_layers, negative_slope=0.2):
    h = x
    for i, (w, b) in enumerate(params):
        h = h @ w + b
        if i < n_layers:
            h = jnp.where(h >= 0, h, negative_slope * h)
    return h


if __name__ == "__main__":
    # Small, module-consistent shapes.
    batch = 2
    input_size = 16
    hidden_size = 32
    n_labels = 4
    n_layers = 2
    dropout_p = 0.0

    key = jax.random.PRNGKey(0)
    key, kx = jax.random.split(key)
    x = jax.random.normal(kx, (batch, input_size), dtype=jnp.float32)

    params = init_fc_discriminator_params(
        key, input_size, hidden_size, n_labels, n_layers)
    ref = reference_forward(params, x, n_layers)

    # --- float32 operand path (exactly matches PyTorch f32 forward semantics) ---
    w_f32, b_f32, _ = pack_params(params, input_size, hidden_size, n_labels,
                                  compute_dtype=jnp.float32)
    out = fc_discriminator_forward(w_f32, b_f32, x, n_layers=n_layers,
                                   n_labels=n_labels, dropout_p=dropout_p)
    out = jax.block_until_ready(out)
    assert out.shape == (batch, n_labels)
    assert jnp.allclose(out, ref, atol=1e-5, rtol=1e-5)

    # --- bfloat16 operand path (v6e/v7x MXU fast path, f32 accumulate) ---
    w_bf, b_bf, _ = pack_params(params, input_size, hidden_size, n_labels,
                                compute_dtype=jnp.bfloat16)
    out_bf = jax.block_until_ready(
        fc_discriminator_forward(w_bf, b_bf, x, n_layers=n_layers,
                                 n_labels=n_labels, dropout_p=dropout_p))
    assert out_bf.shape == (batch, n_labels)
    assert float(jnp.max(jnp.abs(out_bf - ref))) < 0.1  # loose bf16 sanity check

    print("KERNEL_OK")
</pallas_src>

<mosaic_0001>
module attributes {stable_mosaic.version = 11 : i64} {
  func.func @_fused_mlp_kernel(%arg0: i32, %arg1: i32, %arg2: memref<8x128xf32, #tpu.memory_space<vmem>>, %arg3: memref<1x128x128xf32, #tpu.memory_space<vmem>>, %arg4: memref<1x1x128xf32, #tpu.memory_space<vmem>>, %arg5: memref<8x128xf32, #tpu.memory_space<vmem>>, %arg6: memref<8x128xf32, #tpu.memory_space<vmem>>) attributes {dimension_semantics = [#tpu.dimension_semantics<parallel>, #tpu.dimension_semantics<arbitrary>], iteration_bounds = array<i64: 1, 3>, scalar_prefetch = 0 : i64, scratch_operands = 1 : i64, tpu.core_type = #tpu.core_type<tc>, window_params = [{transform_indices = @transform_0, window_bounds = array<i64: 8, 128>}, {transform_indices = @transform_1, window_bounds = array<i64: 1, 128, 128>}, {transform_indices = @transform_2, window_bounds = array<i64: 1, 1, 128>}, {transform_indices = @transform_3, window_bounds = array<i64: 8, 128>}]} {
    %c0_i32 = arith.constant 0 : i32
    %0 = arith.cmpi eq, %arg1, %c0_i32 : i32
    %1 = arith.extui %0 : i1 to i32
    %c0_i32_0 = arith.constant 0 : i32
    %2 = arith.cmpi ne, %1, %c0_i32_0 : i32
    scf.if %2 {
      %c0_15 = arith.constant 0 : index
      %c0_16 = arith.constant 0 : index
      %22 = vector.load %arg2[%c0_15, %c0_16] : memref<8x128xf32, #tpu.memory_space<vmem>>, vector<8x128xf32>
      %c0_17 = arith.constant 0 : index
      %c0_18 = arith.constant 0 : index
      %23 = vector.load %arg6[%c0_17, %c0_18] : memref<8x128xf32, #tpu.memory_space<vmem>>, vector<8x128xf32>
      tpu.vector_store %arg6[%c0_17, %c0_18], %22 {strides = array<i32>} : memref<8x128xf32, #tpu.memory_space<vmem>>, vector<8x128xf32>,
    } else {
    }
    %c0 = arith.constant 0 : index
    %c0_1 = arith.constant 0 : index
    %3 = vector.load %arg6[%c0, %c0_1] : memref<8x128xf32, #tpu.memory_space<vmem>>, vector<8x128xf32>
    %c0_2 = arith.constant 0 : index
    %c0_3 = arith.constant 0 : index
    %c0_4 = arith.constant 0 : index
    %4 = vector.load %arg3[%c0_2, %c0_3, %c0_4] : memref<1x128x128xf32, #tpu.memory_space<vmem>>, vector<1x128x128xf32>
    %5 = vector.shape_cast %4 : vector<1x128x128xf32> to vector<128x128xf32>
    %cst = arith.constant dense<0.000000e+00> : vector<8x128xf32>
    %6 = tpu.matmul %3, %5, %cst {dimension_numbers = #tpu.dot_dimension_numbers<[1], [0], [0], [1], [0, 0, 1, 1], [], []>} : vector<8x128xf32>, vector<128x128xf32>, vector<8x128xf32> -> vector<8x128xf32>
    %c0_5 = arith.constant 0 : index
    %c0_6 = arith.constant 0 : index
    %c0_7 = arith.constant 0 : index
    %7 = vector.load %arg4[%c0_5, %c0_6, %c0_7] : memref<1x1x128xf32, #tpu.memory_space<vmem>>, vector<1x1x128xf32>
    %8 = vector.shape_cast %7 : vector<1x1x128xf32> to vector<1x128xf32>
    %9 = vector.broadcast %8 : vector<1x128xf32> to vector<8x128xf32>
    %10 = arith.addf %6, %9 : vector<8x128xf32>
    %c2_i32 = arith.constant 2 : i32
    %11 = arith.cmpi slt, %arg1, %c2_i32 : i32
    %cst_8 = arith.constant 2.000000e-01 : f32
    %cst_9 = arith.constant 1.000000e+00 : f32
    %12 = arith.select %11, %cst_8, %cst_9 : f32
    %cst_10 = arith.constant 0.000000e+00 : f32
    %13 = vector.broadcast %cst_10 : f32 to vector<8x128xf32>
    %14 = arith.cmpf oge, %10, %13 : vector<8x128xf32>
    %15 = vector.broadcast %12 : f32 to vector<8x128xf32>
    %16 = arith.mulf %15, %10 : vector<8x128xf32>
    %17 = arith.select %14, %10, %16 : vector<8x128xi1>, vector<8x128xf32>
    %c0_11 = arith.constant 0 : index
    %c0_12 = arith.constant 0 : index
    %18 = vector.load %arg6[%c0_11, %c0_12] : memref<8x128xf32, #tpu.memory_space<vmem>>, vector<8x128xf32>
    tpu.vector_store %arg6[%c0_11, %c0_12], %17 {strides = array<i32>} : memref<8x128xf32, #tpu.memory_space<vmem>>, vector<8x128xf32>,
    %c2_i32_13 = arith.constant 2 : i32
    %19 = arith.cmpi eq, %arg1, %c2_i32_13 : i32
    %20 = arith.extui %19 : i1 to i32
    %c0_i32_14 = arith.constant 0 : i32
    %21 = arith.cmpi ne, %20, %c0_i32_14 : i32
    scf.if %21 {
      %c0_15 = arith.constant 0 : index
      %c0_16 = arith.constant 0 : index
      %22 = vector.load %arg5[%c0_15, %c0_16] : memref<8x128xf32, #tpu.memory_space<vmem>>, vector<8x128xf32>
      tpu.vector_store %arg5[%c0_15, %c0_16], %17 {strides = array<i32>} : memref<8x128xf32, #tpu.memory_space<vmem>>, vector<8x128xf32>,
    } else {
    }
    return
  }
  func.func @transform_0(%arg0: i32, %arg1: i32) -> (i32, i32) {
    %c0_i32 = arith.constant 0 : i32
    %c0_i32_0 = arith.constant 0 : i32
    return %arg0, %c0_i32 : i32, i32
  }
  func.func @transform_1(%arg0: i32, %arg1: i32) -> (i32, i32, i32) {
    %c0_i32 = arith.constant 0 : i32
    %c0_i32_0 = arith.constant 0 : i32
    %c0_i32_1 = arith.constant 0 : i32
    return %arg1, %c0_i32, %c0_i32_0 : i32, i32, i32
  }
  func.func @transform_2(%arg0: i32, %arg1: i32) -> (i32, i32, i32) {
    %c0_i32 = arith.constant 0 : i32
    %c0_i32_0 = arith.constant 0 : i32
    %c0_i32_1 = arith.constant 0 : i32
    return %arg1, %c0_i32, %c0_i32_0 : i32, i32, i32
  }
  func.func @transform_3(%arg0: i32, %arg1: i32) -> (i32, i32) {
    %c0_i32 = arith.constant 0 : i32
    %c0_i32_0 = arith.constant 0 : i32
    return %arg0, %c0_i32 : i32, i32
  }
}

</mosaic_0001>

<bundles_post_ra>
// kernel: tpu_custom_call.1
= control target key start
LH: loop header
LB: loop body
LE: loop exit
PB: predicated region body
PF: predicated region fallthrough
CT: control target
= control target key end

     0   :  { %8 = vsyncpa [#allocation4], 0  ;;  %s1009_s0 = inlined_call_operand.hbm [shape: f32[8,128], index: 0, kind: input, shape index: {}]   ;;  %s1010_s1 = inlined_call_operand.hbm [shape: f32[3,128,128], index: 1, kind: input, shape index: {}]   ;;  %s1011_s2 = inlined_call_operand.vmem [shape: f32[3,1,128], index: 2, kind: input, shape index: {}]   ;;  %s1012_s3 = inlined_call_operand.hbm [shape: f32[8,128], index: 3, kind: output, shape index: {}]  }
   0x1   :  { %9 = vsyncpa [#allocation7], 0 }
   0x2   :  { %11 = vsyncpa [#allocation7 + $0x1], 0 }
   0x3   :  { %12 = vsyncpa [#allocation5], 0  ;;  %s777_s12 = smov 0   ;;  %s779_s13 = smov 0  }
   0x4   :  { %s781_s14 = smov 0   ;;  %s783_s15 = smov 0  }
   0x5   :  { %s785_s16 = smov 0   ;;  %s787_s17 = smov 0  }
   0x6 LB: > { %s433_s18 = sadd.s32 4294967295, %s747_s17   ;;  %s63_s19 = sadd.s32 1, %s735_s14  ;;  %s747_s17 = sphi %s787_s17, %s18_s17   ;;  %s743_s16 = sphi %s785_s16, %s1033_s16   ;;  %s739_s15 = sphi %s783_s15, %s1032_s15   ;;  %s735_s14 = sphi %s781_s14, %s1031_s14   ;;  %s731_s13 = sphi %s779_s13, %s1030_s13   ;;  %s727_s12 = sphi %s777_s12, %s1029_s12  }
   0x7   : > { %p70_p0 = scmp.ne.s32.totalorder %s735_s14, %s731_s13  ;;  %p71_p1 = scmp.eq.s32.totalorder %s747_s17, 0 }
   0x8   : > { %p76_p2 = scmp.ne.s32.totalorder %s731_s13, %s727_s12  ;;  %p813_p3 = scmp.eq.s32.totalorder %s433_s18, 0 }
   0x9   : > { %p72_p4 = por %p71_p1, %p70_p0  ;;  %p434_p5 = scmp.ge.s32.totalorder %s747_s17, 1 }
   0xa   : > { %s1018_s20 = scalar_select %p813_p3, 1, 0 }
   0xb   : > { %p820_p6 = por %p813_p3, %p76_p2  ;;  %p139_p7 = scmp.lt.s32.totalorder %s747_s17, 4 }
   0xc   : > { %s749_s23 = smov [#allocation3]   ;;  %p546_p10 = scmp.lt.s32.totalorder %s747_s17, 3 }
   0xd   : > { %s1019_s21 = scalar_select %p820_p6, 1, 0 }
   0xe   : > { %p825_p8 = pnand %p434_p5, %p139_p7  ;;  %s154_s24 = sshll.u32 %s749_s23, 4  ;;  %s155_s24 = int_to_ptr.vmem [resolvable:$true] %s154_s24 }
   0xf   : > { %s165_s25 = sand.u32 1, %s735_s14   ;;  %p839_p12 = pnand %p546_p10, %p72_p4 }
  0x10   : > { %s1020_s22 = scalar_select %p825_p8, 1, 0 }
  0x11   : > { %p537_p9 = pneg %p825_p8  ;;  %s605_s30 = scalar_lea.hbm %s1009_s0, 128 }
  0x12   : > { %s1022_s27 = scalar_select %p839_p12, 1, 0 }
  0x13   : > { %p835_p11 = pnand %p537_p9, %p813_p3  ;;  %p606_p13 = scmp.ne.s32.totalorder %s1009_s0, %s605_s30 }
  0x14   : > { %p612_p5 = scmp.lt.u32.totalorder %s605_s30, %s1009_s0 }
  0x15   : > { %p607_p0 = pneg %p835_p11 }
  0x17   : > { %p608_p1 = pnand %p607_p0, %p606_p13 }
  0x19   : > { %p609_p2 = pneg %p608_p1 }
  0x1b   : > { %p614_p4 = pnand %p612_p5, %p609_p2 }
  0x1d   : > { %617 = shalt.err (!%p614_p4)
}
  0x1e   : > { %s618_s8 = scalar_lea.vmem %s155_s24, 128  ;;  %p626_p6 = scmp.lt.s32.totalorder %s155_s24, %s155_s24 }
  0x1f   : > { %p619_p7 = scmp.ne.s32.totalorder %s155_s24, %s618_s8  ;;  %p627_p3 = scmp.lt.s32.totalorder %s618_s8, %s618_s8 }
  0x21   : > { %p621_p9 = pnand %p619_p7, %p607_p0  ;;  %p628_p8 = por %p627_p3, %p626_p6 }
  0x23   : > { %p622_p10 = pneg %p621_p9 }
  0x25   : > { %p629_p12 = pnand %p628_p8, %p622_p10 }
  0x27   : > { %632 = shalt.err (!%p629_p12)
}
  0x28   : > { %540 = dma.hbm_to_vmem [thread:$0]  (!%p835_p11), %s1009_s0, 128, %s155_s24, [#allocation4]  }
  0x29   : > { %s27_s11 = sadd.s32 1, %s743_s16  ;;  %s437_s12 = sshll.u32 %s165_s25, 7 }
  0x2a   : > { %p28_p13 = scmp.ge.s32.totalorder %s27_s11, 3  ;;  %s450_s23 = sshll.u32 %s743_s16, 11 }
  0x2b   : > { %s169_s28 = scalar_lea.vmem [#allocation6], %s437_s12  ;;  %s868_s4 = scalar_lea.hbm %s1010_s1, %s450_s23 }
  0x2c   : > { %s176_s29 = sshll.u32 %s169_s28, 4  ;;  %s1035_s11 = smov (%p28_p13, %s27_s11), 0  ;;  %s870_s29 = int_to_ptr.vmem [resolvable:$true] %s176_s29 }
  0x2d   : > { %s60_s24 = ssub.s32 %s743_s16, %s1035_s11  ;;  %s880_s6 = scalar_lea.sflag [#allocation7], %s165_s25 }
  0x2e   : > { %p874_p3 = scmp.eq.s32.totalorder %s60_s24, 0  ;;  %s633_s7 = scalar_lea.hbm %s868_s4, 2048 }
  0x2f   : > { %p634_p6 = scmp.ne.s32.totalorder %s868_s4, %s633_s7  ;;  %p1024_p8 = scmp.ne.s32.totalorder %s1022_s27, 0 }
  0x30   : > { %s638_s10 = scalar_lea.hbm %s1010_s1, 6144  ;;  %p639_p1 = scmp.lt.u32.totalorder %s868_s4, %s1010_s1 }
  0x31   : > { %p635_p11 = pneg %p1024_p8  ;;  %p640_p2 = scmp.lt.u32.totalorder %s638_s10, %s633_s7 }
  0x32   : > { %p642_p4 = scmp.lt.u32.totalorder %s633_s7, %s868_s4 }
  0x33   : > { %p636_p12 = pnand %p635_p11, %p634_p6  ;;  %p641_p5 = por %p640_p2, %p639_p1 }
  0x35   : > { %p637_p0 = pneg %p636_p12  ;;  %p643_p7 = por %p642_p4, %p641_p5 }
  0x37   : > { %p644_p9 = pnand %p643_p7, %p637_p0 }
  0x39   : > { %647 = shalt.err (!%p644_p9)
}
  0x3a   : > { %s648_s25 = scalar_lea.vmem %s870_s29, 2048  ;;  %s750_s28 = smov [#allocation6]  }
  0x3b   : > { %p649_p10 = scmp.ne.s32.totalorder %s870_s29, %s648_s25  ;;  %s653_s26 = sshll.u32 %s750_s28, 4  ;;  %s654_s26 = int_to_ptr.vmem [resolvable:$false] %s653_s26 }
  0x3c   : > { %s655_s30 = scalar_lea.vmem %s654_s26, 4096  ;;  %p656_p12 = scmp.lt.s32.totalorder %s870_s29, %s654_s26 }
  0x3d   : > { %p651_p13 = pnand %p649_p10, %p635_p11  ;;  %p657_p1 = scmp.lt.s32.totalorder %s655_s30, %s648_s25 }
  0x3f   : > { %p652_p6 = pneg %p651_p13  ;;  %p658_p2 = por %p657_p1, %p656_p12 }
  0x41   : > { %p659_p5 = pnand %p658_p2, %p652_p6 }
  0x43   : > { %662 = shalt.err (!%p659_p5)
}
  0x44   : > { %s751_s24 = smov 128   ;;  %s752_s7 = smov 8  }
  0x45   : > { %544 = dma.hbm_to_vmem [thread:$0]  (!%p1024_p8), %s868_s4, 2048, %s870_s29, %s880_s6, %s751_s24, %s751_s24, %s752_s7  }
  0x46   : > { %s913_s8 = scalar_select %p874_p3, %s735_s14, %s63_s19  }
  0x47   : > { %p1025_p11 = scmp.ne.s32.totalorder %s1020_s22, 0 }
  0x48   : > { %p1026_p0 = scmp.ne.s32.totalorder (!%p1025_p11), %s1018_s20, 0 }
  0x49   : > { %194 = sbr.rel (%p1025_p11) target bundleno = 372 (0x174), region = 32 }
  0x50   : > { %714 = dma.done.wait (%p1026_p0), [#allocation4], 128  }
  0x51   : > { %716 = vsyncadd (%p1026_p0), [#allocation4], 4294967168  ;;  %s200_s9 = sand.u32 1, %s731_s13   ;;  %p1027_p8 = scmp.ne.s32.totalorder %s1019_s21, 0 }
  0x52   : > { %s442_s10 = sshll.u32 %s200_s9, 7  ;;  %s201_s12 = scalar_lea.sflag [#allocation7], %s200_s9 }
  0x53   : > { %s922_s27 = scalar_lea.vmem [#allocation6], %s442_s10 }
  0x54   : > { %718 = dma.done.wait (%p1027_p8), %s201_s12, 2048  }
  0x55   : > { %720 = vsyncadd (%p1027_p8), %s201_s12, 4294965248  ;;  %p225_p3 = scmp.lt.s32.totalorder %s739_s15, 2  ;;  %p443_p4 = scmp.ne.s32.totalorder %s739_s15, 0 }
  0x56   : > { %v232_v0 = vld [vmem:[#allocation3] sm:$0xff] (!%p443_p4) }
  0x57   : > { %s932_s19 = scalar_select %p225_p3, %s739_s15, 2 }
  0x58   : > { %231 = sbr.rel (%p443_p4) target bundleno = 95 (0x5f), region = 44  ;;  %233 = vst [vmem:[#allocation2] sm:$0xff] (!%p443_p4), %v232_v0 }
  0x59   : > { %s227_s29 = scalar_lea.vmem %s1011_s2, %s932_s19 }
  0x5f PF: > { %v235_v1 = vld [vmem:[%s922_s27] sm:$0xff]  ;;  %v236_v2 = vld [vmem:[%s922_s27 + $0x8] sm:$0xff]  ;;  %v237_v3 = vld [vmem:[%s922_s27 + $0x10] sm:$0xff]  ;;  %v753_v4 = vmov 0.0|0.0   ;;  %vm754_vm0 = vmmov 0   ;;  %v755_v7 = vmov 0.0  }
  0x60   : > { %503 = vmatprep.subr.bf16.mxu0 %v753_v4  ;;  %v504_v5 = vpack.c.bf16 %v236_v2, %v235_v1  ;;  %v238_v6 = vld [vmem:[%s922_s27 + $0x18] sm:$0xff]  ;;  %500 = vmatprep.mubr.msk.f32.mxu0 %vm754_vm0, %v755_v7  ;;  %v239_v9 = vld [vmem:[%s922_s27 + $0x20] sm:$0xff]  ;;  %v240_v10 = vld [vmem:[%s922_s27 + $0x28] sm:$0xff]  ;;  %s329_s21 = scalar_select %p225_p3, 0.2, 1.0 }
  0x61   : > { %v507_v8 = vpack.c.bf16 %v238_v6, %v237_v3  ;;  %v510_v11 = vpack.c.bf16 %v240_v10, %v239_v9  ;;  %v241_v12 = vld [vmem:[%s922_s27 + $0x30] sm:$0xff]  ;;  %v242_v13 = vld [vmem:[%s922_s27 + $0x38] sm:$0xff]  ;;  %v243_v15 = vld [vmem:[%s922_s27 + $0x40] sm:$0xff]  ;;  %p445_p7 = scmp.ne.s32.totalorder %s739_s15, 2 }
  0x62   : > { %505 = vmatpush3.bf16.msra.mxu0 %v504_v5  ;;  %v513_v14 = vpack.c.bf16 %v242_v13, %v241_v12  ;;  %v244_v16 = vld [vmem:[%s922_s27 + $0x48] sm:$0xff]  ;;  %v245_v18 = vld [vmem:[%s922_s27 + $0x50] sm:$0xff]  ;;  %v246_v19 = vld [vmem:[%s922_s27 + $0x58] sm:$0xff]  ;;  %v331_v30 = vstv %s329_s21 }
  0x63   : > { %506 = vmatprep.subr.bf16.mxu0 %v753_v4  ;;  %v516_v17 = vpack.c.bf16 %v244_v16, %v243_v15  ;;  %v519_v20 = vpack.c.bf16 %v246_v19, %v245_v18  ;;  %v247_v21 = vld [vmem:[%s922_s27 + $0x60] sm:$0xff]  ;;  %v248_v22 = vld [vmem:[%s922_s27 + $0x68] sm:$0xff]  ;;  %v249_v24 = vld [vmem:[%s922_s27 + $0x70] sm:$0xff] }
  0x64   : > { %v522_v23 = vpack.c.bf16 %v248_v22, %v247_v21  ;;  %v250_v25 = vld [vmem:[%s922_s27 + $0x78] sm:$0xff]  ;;  %v234_v27 = vld [vmem:[#allocation2] sm:$0xff] }
  0x65   : > { %v525_v26 = vpack.c.bf16 %v250_v25, %v249_v24  ;;  %v444_v28 = vld [vmem:[%s227_s29] ss:$0 sm:$0xff] }
  0x66   : > { %508 = vmatpush3.bf16.msra.mxu0 %v507_v8 }
  0x67   : > { %509 = vmatprep.subr.bf16.mxu0 %v753_v4 }
  0x6a   : > { %511 = vmatpush3.bf16.msra.mxu0 %v510_v11 }
  0x6b   : > { %512 = vmatprep.subr.bf16.mxu0 %v753_v4 }
  0x6e   : > { %514 = vmatpush3.bf16.msra.mxu0 %v513_v14 }
  0x6f   : > { %515 = vmatprep.subr.bf16.mxu0 %v753_v4 }
  0x72   : > { %517 = vmatpush3.bf16.msra.mxu0 %v516_v17 }
  0x73   : > { %518 = vmatprep.subr.bf16.mxu0 %v753_v4 }
  0x76   : > { %520 = vmatpush3.bf16.msra.mxu0 %v519_v20 }
  0x77   : > { %521 = vmatprep.subr.bf16.mxu0 %v753_v4 }
  0x7a   : > { %523 = vmatpush3.bf16.msra.mxu0 %v522_v23 }
  0x7b   : > { %524 = vmatprep.subr.bf16.mxu0 %v753_v4 }
  0x7e   : > { %526 = vmatpush3.bf16.msra.mxu0 %v525_v26 }
  0x81   : > { %501 = vmatmul.mubr.f32.vlgmr.msra.gmra.mrb[0].mxu0 %v234_v27 }
 0x154   : > { %v324_v29 = vpop.f32.mrb[0].mxu0  ;;  %338 = sbr.rel (%p445_p7) target bundleno = 347 (0x15b), region = 48 }
 0x155   : > { %v325_v31 = vadd.f32 %v444_v28, %v324_v29  ;;  %v502_v32 = vpop.f32.mrb[1].mxu0 }
 0x157   : > { %vm330_vm1 = vcmp.ge.f32.partialorder %v325_v31, 0.0  ;;  %v332_v33 = vmul.f32 %v331_v30, %v325_v31 }
 0x159   : > { %v333_v34 = vsel %vm330_vm1, %v325_v31, %v332_v33 }
 0x15a   : > { %334 = vst [vmem:[#allocation2] sm:$0xff] %v333_v34  ;;  %339 = vst [vmem:[#allocation8] sm:$0xff] (!%p445_p7), %v333_v34 }
 0x15b PF: > { %p965_p9 = scmp.eq.s32.totalorder %s433_s18, 2  ;;  %s756_s23 = smov [#allocation8]  }
 0x15c   : > { %s349_s25 = sshll.u32 %s756_s23, 4  ;;  %s350_s25 = int_to_ptr.vmem [resolvable:$true] %s349_s25 }
 0x15d   : > { %s663_s28 = scalar_lea.vmem %s350_s25, 128  ;;  %p670_p12 = scmp.lt.s32.totalorder %s350_s25, %s350_s25 }
 0x15e   : > { %p664_p10 = scmp.ne.s32.totalorder %s350_s25, %s663_s28  ;;  %p671_p1 = scmp.lt.s32.totalorder %s663_s28, %s663_s28 }
 0x160   : > { %p665_p13 = pnand %p664_p10, %p965_p9  ;;  %p672_p2 = por %p671_p1, %p670_p12 }
 0x162   : > { %p666_p6 = pneg %p665_p13 }
 0x164   : > { %p673_p5 = pnand %p672_p2, %p666_p6 }
 0x166   : > { %676 = shalt.err (!%p673_p5)
}
 0x167   : > { %s677_s18 = scalar_lea.hbm %s1012_s3, 128 }
 0x168   : > { %p678_p11 = scmp.ne.s32.totalorder %s1012_s3, %s677_s18  ;;  %p683_p3 = scmp.lt.u32.totalorder %s677_s18, %s1012_s3 }
 0x16a   : > { %p679_p0 = pnand %p678_p11, %p965_p9 }
 0x16c   : > { %p680_p8 = pneg %p679_p0 }
 0x16e   : > { %p685_p4 = pnand %p683_p3, %p680_p8 }
 0x170   : > { %688 = shalt.err (!%p685_p4)
}
 0x171   : > { %534 = dma.vmem_to_hbm [thread:$0]  (%p965_p9), %s350_s25, 128, %s1012_s3, [#allocation5]  }
 0x172   : > { %722 = dma.done.wait (%p965_p9), [#allocation5], 128  }
 0x173   : > { %724 = vsyncadd (%p965_p9), [#allocation5], 4294967168 }
 0x174 PF: > { %s18_s17 = sadd.s32 1, %s747_s17   ;;  %s1029_s12 = smov %s731_s13 }
 0x175   : > { %p15_p7 = scmp.ge.s32.totalorder %s18_s17, 5   ;;  %s1030_s13 = smov %s735_s14 }
 0x176   : > { %s1031_s14 = smov %s913_s8  ;;  %s1032_s15 = smov %s743_s16 }
 0x177   : > { %s1033_s16 = smov %s1035_s11  ;;  %17 = sbr.rel (!%p15_p7) target bundleno = 6 (0x6), region = 87 }
 0x17e   :  { %362 = vsyncpa [#allocation4], 1 }
 0x17f   :  { %364 = vsyncpa [#allocation4 + $0x1], 1 }
 0x180   :  { %365 = vsyncpa [#allocation7], 1 }
 0x181   :  { %367 = vsyncpa [#allocation7 + $0x1], 1 }
 0x182   :  { %368 = vsyncpa [#allocation5], 1 }
 0x183   :  { %370 = vsyncpa [#allocation5 + $0x1], 1 }

</bundles_post_ra>
